<compile_context>
chip_gen: v6e
topology: v6e:2x2x1
jax: 0.10.0
libtpu: 0.0.40
codegen_flags: <defaults>
</compile_context>

<pallas_src>
import jax
import jax.numpy as jnp
from jax.experimental import pallas as pl
from jax.experimental.pallas import tpu as pltpu


def _round_up(x, m):
    return ((x + m - 1) // m) * m


def _patch_embed_kernel(p_ref, w_ref, b_ref, o_ref):
    # p_ref: (M_TILE, patch_dim)  bf16 -- one tile of flattened patches
    # w_ref: (patch_dim, emb_dim) bf16 -- grid-invariant, stays resident
    # b_ref: (1, emb_dim)         f32  -- grid-invariant, stays resident
    # o_ref: (M_TILE, emb_dim)         -- lane-dense output (emb_dim % 128 == 0)
    acc = jnp.dot(p_ref[...], w_ref[...], preferred_element_type=jnp.float32)
    o_ref[...] = (acc + b_ref[...]).astype(o_ref.dtype)


def patch_embed(x, weight, bias, patch_size):
    """x: (B, C, H, W) NCHW; weight: (emb_dim, C, p, p); bias: (emb_dim,).

    Returns (B, n_patches, emb_dim) == conv(x, stride=kernel=p).flatten(2).transpose(1, 2).
    """
    B, C, H, W = x.shape
    emb_dim = weight.shape[0]
    p = patch_size
    hp, wp = H // p, W // p
    n_patches = hp * wp
    patch_dim = C * p * p

    # ---- glue: non-overlapping patch extraction, patch vector ordered (c, kh, kw) ----
    # (B, C, hp, p, wp, p) -> (B, hp, wp, C, p, p) -> (B*n_patches, patch_dim)
    patches = x.reshape(B, C, hp, p, wp, p).transpose(0, 2, 4, 1, 3, 5)
    patches = patches.reshape(B * n_patches, patch_dim)

    # ---- merge batch into one M dimension, pad M to full tiles ----
    M = B * n_patches
    # tile multiple of 16 (bf16 sublane packing); keep >=2 tiles for small M
    # so both v7x TensorCores get a "parallel" grid step each.
    m_tile = 64 if M <= 256 else 256
    M_pad = _round_up(M, m_tile)
    num_tiles = M_pad // m_tile

    compute_dtype = jnp.bfloat16
    patches = jnp.pad(patches, ((0, M_pad - M), (0, 0))).astype(compute_dtype)
    w_mat = weight.reshape(emb_dim, patch_dim).T.astype(compute_dtype)   # (patch_dim, emb_dim)
    b_mat = bias.reshape(1, emb_dim).astype(jnp.float32)

    # ---- hot path: single tiled projection matmul in Pallas ----
    out = pl.pallas_call(
        _patch_embed_kernel,
        out_shape=jax.ShapeDtypeStruct((M_pad, emb_dim), x.dtype),
        grid_spec=pl.GridSpec(
            grid=(num_tiles,),
            in_specs=[
                pl.BlockSpec((m_tile, patch_dim), lambda i: (i, 0)),     # streamed patches
                pl.BlockSpec((patch_dim, emb_dim), lambda i: (0, 0)),    # resident weight
                pl.BlockSpec((1, emb_dim), lambda i: (0, 0)),            # resident bias
            ],
            out_specs=pl.BlockSpec((m_tile, emb_dim), lambda i: (i, 0)),
        ),
        compiler_params=pltpu.CompilerParams(
            dimension_semantics=("parallel",),
        ),
        cost_estimate=pl.CostEstimate(
            flops=2 * M_pad * patch_dim * emb_dim,
            transcendentals=0,
            bytes_accessed=(M_pad * patch_dim * 2
                            + patch_dim * emb_dim * 2
                            + emb_dim * 4
                            + M_pad * emb_dim * x.dtype.itemsize),
        ),
    )(patches, w_mat, b_mat)

    return out[:M].reshape(B, n_patches, emb_dim)


def init_patch_embed_params(key, patch_size=4, emb_dim=256, in_ch=1):
    """PyTorch-style Conv2d(in_ch, emb_dim, p, p) init: uniform(-1/sqrt(fan_in), 1/sqrt(fan_in))."""
    kw, kb = jax.random.split(key)
    fan_in = in_ch * patch_size * patch_size
    bound = 1.0 / jnp.sqrt(jnp.float32(fan_in))
    weight = jax.random.uniform(
        kw, (emb_dim, in_ch, patch_size, patch_size),
        minval=-bound, maxval=bound, dtype=jnp.float32)
    bias = jax.random.uniform(
        kb, (emb_dim,), minval=-bound, maxval=bound, dtype=jnp.float32)
    return weight, bias


if __name__ == "__main__":
    img_size, patch_size, emb_dim = 28, 4, 256
    B, C = 2, 1

    key = jax.random.PRNGKey(0)
    kx, kp = jax.random.split(key)
    x = jax.random.normal(kx, (B, C, img_size, img_size), dtype=jnp.float32)
    weight, bias = init_patch_embed_params(kp, patch_size, emb_dim, C)

    fn = jax.jit(patch_embed, static_argnames="patch_size")
    out = jax.block_until_ready(fn(x, weight, bias, patch_size))

    # reference: conv(stride==kernel) == patchify + matmul; reference uses the
    # same bf16-cast inputs as the kernel's MXU path, accumulated in f32.
    hp = wp = img_size // patch_size
    ref_patches = x.reshape(B, C, hp, patch_size, wp, patch_size)
    ref_patches = ref_patches.transpose(0, 2, 4, 1, 3, 5).reshape(B, hp * wp, -1)
    pb = ref_patches.astype(jnp.bfloat16).astype(jnp.float32)
    wb = weight.reshape(emb_dim, -1).T.astype(jnp.bfloat16).astype(jnp.float32)
    ref = pb @ wb + bias[None, None, :]

    assert out.shape == (B, hp * wp, emb_dim)
    assert jnp.allclose(out, ref, atol=1e-4, rtol=1e-4), float(jnp.max(jnp.abs(out - ref)))

    print("KERNEL_OK")
</pallas_src>

<mosaic_0001>
module attributes {stable_mosaic.version = 11 : i64} {
  func.func @_patch_embed_kernel(%arg0: i32, %arg1: memref<64x16xbf16, #tpu.memory_space<vmem>>, %arg2: memref<16x256xbf16, #tpu.memory_space<vmem>>, %arg3: memref<1x256xf32, #tpu.memory_space<vmem>>, %arg4: memref<64x256xf32, #tpu.memory_space<vmem>>) attributes {dimension_semantics = [#tpu.dimension_semantics<parallel>], iteration_bounds = array<i64: 2>, scalar_prefetch = 0 : i64, scratch_operands = 0 : i64, tpu.core_type = #tpu.core_type<tc>, window_params = [{transform_indices = @transform_0, window_bounds = array<i64: 64, 16>}, {pipeline_mode = #tpu.pipeline_mode<synchronous>, transform_indices = @transform_1, window_bounds = array<i64: 16, 256>}, {pipeline_mode = #tpu.pipeline_mode<synchronous>, transform_indices = @transform_2, window_bounds = array<i64: 1, 256>}, {transform_indices = @transform_3, window_bounds = array<i64: 64, 256>}]} {
    %c0 = arith.constant 0 : index
    %c0_0 = arith.constant 0 : index
    %0 = vector.load %arg1[%c0, %c0_0] : memref<64x16xbf16, #tpu.memory_space<vmem>>, vector<64x16xbf16>
    %c0_1 = arith.constant 0 : index
    %c0_2 = arith.constant 0 : index
    %1 = vector.load %arg2[%c0_1, %c0_2] : memref<16x256xbf16, #tpu.memory_space<vmem>>, vector<16x256xbf16>
    %cst = arith.constant dense<0.000000e+00> : vector<64x256xf32>
    %2 = tpu.matmul %0, %1, %cst {dimension_numbers = #tpu.dot_dimension_numbers<[1], [0], [0], [1], [0, 0, 1, 1], [], []>} : vector<64x16xbf16>, vector<16x256xbf16>, vector<64x256xf32> -> vector<64x256xf32>
    %c0_3 = arith.constant 0 : index
    %c0_4 = arith.constant 0 : index
    %3 = vector.load %arg3[%c0_3, %c0_4] : memref<1x256xf32, #tpu.memory_space<vmem>>, vector<1x256xf32>
    %4 = vector.broadcast %3 : vector<1x256xf32> to vector<64x256xf32>
    %5 = arith.addf %2, %4 : vector<64x256xf32>
    %c0_5 = arith.constant 0 : index
    %c0_6 = arith.constant 0 : index
    %6 = vector.load %arg4[%c0_5, %c0_6] : memref<64x256xf32, #tpu.memory_space<vmem>>, vector<64x256xf32>
    tpu.vector_store %arg4[%c0_5, %c0_6], %5 {strides = array<i32>} : memref<64x256xf32, #tpu.memory_space<vmem>>, vector<64x256xf32>,
    return
  }
  func.func @transform_0(%arg0: i32) -> (i32, i32) {
    %c0_i32 = arith.constant 0 : i32
    %c0_i32_0 = arith.constant 0 : i32
    return %arg0, %c0_i32 : i32, i32
  }
  func.func @transform_1(%arg0: i32) -> (i32, i32) {
    %c0_i32 = arith.constant 0 : i32
    %c0_i32_0 = arith.constant 0 : i32
    %c0_i32_1 = arith.constant 0 : i32
    return %c0_i32, %c0_i32_0 : i32, i32
  }
  func.func @transform_2(%arg0: i32) -> (i32, i32) {
    %c0_i32 = arith.constant 0 : i32
    %c0_i32_0 = arith.constant 0 : i32
    %c0_i32_1 = arith.constant 0 : i32
    return %c0_i32, %c0_i32_0 : i32, i32
  }
  func.func @transform_3(%arg0: i32) -> (i32, i32) {
    %c0_i32 = arith.constant 0 : i32
    %c0_i32_0 = arith.constant 0 : i32
    return %arg0, %c0_i32 : i32, i32
  }
}

</mosaic_0001>

<bundles_post_ra>
// kernel: patch_embed.1
= control target key start
LH: loop header
LB: loop body
LE: loop exit
PB: predicated region body
PF: predicated region fallthrough
CT: control target
= control target key end

     0   :  { %s459_s12 = smov 0   ;;  %s503_s0 = inlined_call_operand.vmem [shape: bf16[128,16], index: 0, kind: input, shape index: {}]   ;;  %s504_s1 = inlined_call_operand.vmem [shape: bf16[16,256], index: 1, kind: input, shape index: {}]   ;;  %s505_s2 = inlined_call_operand.vmem [shape: f32[1,256], index: 2, kind: input, shape index: {}]   ;;  %s506_s3 = inlined_call_operand.vmem [shape: f32[128,256], index: 3, kind: output, shape index: {}]  }
   0x1 LB: > { %s389_s13 = sadd.s32 4294967295, %s436_s12   ;;  %p393_p0 = scmp.ge.s32.totalorder %s436_s12, 1  ;;  %s436_s12 = sphi %s459_s12, %s13_s12  }
   0x2   : > { %p138_p1 = scmp.lt.s32.totalorder %s436_s12, 3 }
   0x4   : > { %p139_p2 = pnand %p393_p0, %p138_p1 }
   0x5   : > { %s394_s16 = sshll.u32 (!%p139_p2), %s389_s13, 3 }
   0x6   : > { %142 = sbr.rel (%p139_p2) target bundleno = 227 (0xe3), region = 32  ;;  %p164_p3 = scmp.lt.s32.totalorder (!%p139_p2), %s394_s16, 15 }
   0xb   : > { %v423_v0 = vld [vmem:[%s504_s1 + $0x4] ss:$8 sps:$4 sm:$0xff]   ;;  %v425_v1 = vld [vmem:[%s504_s1] ss:$8 sps:$4 sm:$0xff]   ;;  %v438_v2 = vmov 0   ;;  %s508_s16 = smov (!%p164_p3, %s394_s16), 15  ;;  %v189_v7 = vlaneseq }
   0xc   : > { %274 = vmatprep.mubr.bf16.mxu0 %v438_v2  ;;  %294 = vmatprep.mubr.bf16.mxu1 %v438_v2  ;;  %s395_s19 = sshll.u32 %s508_s16, 2  ;;  %vm229_vm0 = vcmask 130048   ;;  %v187_v10 = vld [vmem:[%s505_s2] sm:$0x3]  ;;  %s411_s25 = sshll.u32 %s508_s16, 4 }
   0xd   : > { %256 = vmatprep.subr.bf16.mxu0 %v423_v0  ;;  %412 = vmatprep.subr.bf16.mxu1 %v423_v0  ;;  %s167_s22 = scalar_lea.vmem %s503_s0, %s395_s19  ;;  %v190_v8 = vshrl.u32 %v189_v7, 7  ;;  %s482_s28 = scalar_lea.vmem %s506_s3, %s411_s25 }
   0xe   : > { %257 = vmatpush1.bf16.msra.mxu0 %v425_v1  ;;  %413 = vmatpush1.bf16.msra.mxu1 %v425_v1  ;;  %v426_v3 = vld [vmem:[%s167_s22] sm:$0xff]   ;;  %v427_v4 = vld [vmem:[%s167_s22 + $0x10] sm:$0xff]   ;;  %v428_v5 = vld [vmem:[%s167_s22 + $0x8] sm:$0xff]  }
   0xf   : > { %v429_v6 = vld [vmem:[%s167_s22 + $0x18] sm:$0xff]   ;;  %v191_v9 = vsub.s32 0, %v190_v8  ;;  %v195_v11 = vsub.s32 1, %v190_v8 }
  0x11   : > { %405 = vmatmul.mubr.msk.bf16.vlgmr.msra.gmra.mxu0 %vm229_vm0, %v426_v3  ;;  %407 = vmatmul.mubr.msk.bf16.vlgmr.msra.gmra.mxu1 %vm229_vm0, %v427_v4  ;;  %v192_v12 = vrot.slane %v187_v10, %v191_v9  ;;  %v196_v13 = vrot.slane %v187_v10, %v195_v11 }
  0x12   : > { %284 = vmatprep.mubr.bf16.mxu0 %v438_v2  ;;  %304 = vmatprep.mubr.bf16.mxu1 %v438_v2 }
  0x19   : > { %406 = vmatmul.mubr.msk.bf16.gmra.mxu0 %vm229_vm0, %v428_v5  ;;  %408 = vmatmul.mubr.msk.bf16.gmra.mxu1 %vm229_vm0, %v429_v6 }
  0xd1   : > { %v276_v14 = vpop.f32.mrf.mxu0  ;;  %v296_v16 = vpop.f32.mrf.mxu1 }
  0xd2   : > { %v277_v15 = vadd.f32 %v276_v14, %v192_v12  ;;  %v297_v17 = vadd.f32 %v296_v16, %v192_v12 }
  0xd3   : > { %v278_v18 = vpop.f32.mrf.mxu0  ;;  %v298_v20 = vpop.f32.mrf.mxu1 }
  0xd4   : > { %315 = vst [vmem:[%s482_s28] sm:$0xff] %v277_v15  ;;  %v279_v19 = vadd.f32 %v278_v18, %v196_v13  ;;  %323 = vst [vmem:[%s482_s28 + $0x40] sm:$0xff] %v297_v17  ;;  %v299_v21 = vadd.f32 %v298_v20, %v196_v13 }
  0xd5   : > { %v280_v22 = vpop.f32.mrf.mxu0  ;;  %v300_v24 = vpop.f32.mrf.mxu1 }
  0xd6   : > { %316 = vst [vmem:[%s482_s28 + $0x8] sm:$0xff] %v279_v19  ;;  %v281_v23 = vadd.f32 %v280_v22, %v192_v12  ;;  %324 = vst [vmem:[%s482_s28 + $0x48] sm:$0xff] %v299_v21  ;;  %v301_v25 = vadd.f32 %v300_v24, %v192_v12 }
  0xd7   : > { %v282_v26 = vpop.f32.mrf.mxu0  ;;  %v302_v28 = vpop.f32.mrf.mxu1 }
  0xd8   : > { %317 = vst [vmem:[%s482_s28 + $0x10] sm:$0xff] %v281_v23  ;;  %v283_v27 = vadd.f32 %v282_v26, %v196_v13  ;;  %325 = vst [vmem:[%s482_s28 + $0x50] sm:$0xff] %v301_v25  ;;  %v303_v29 = vadd.f32 %v302_v28, %v196_v13 }
  0xd9   : > { %v286_v30 = vpop.f32.mrf.mxu0  ;;  %v306_v32 = vpop.f32.mrf.mxu1 }
  0xda   : > { %318 = vst [vmem:[%s482_s28 + $0x18] sm:$0xff] %v283_v27  ;;  %v287_v31 = vadd.f32 %v286_v30, %v192_v12  ;;  %326 = vst [vmem:[%s482_s28 + $0x58] sm:$0xff] %v303_v29  ;;  %v307_v33 = vadd.f32 %v306_v32, %v192_v12 }
  0xdb   : > { %v288_v34 = vpop.f32.mrf.mxu0  ;;  %v308_v36 = vpop.f32.mrf.mxu1 }
  0xdc   : > { %319 = vst [vmem:[%s482_s28 + $0x20] sm:$0xff] %v287_v31  ;;  %v289_v35 = vadd.f32 %v288_v34, %v196_v13  ;;  %327 = vst [vmem:[%s482_s28 + $0x60] sm:$0xff] %v307_v33  ;;  %v309_v37 = vadd.f32 %v308_v36, %v196_v13 }
  0xdd   : > { %v290_v38 = vpop.f32.mrf.mxu0  ;;  %v310_v40 = vpop.f32.mrf.mxu1 }
  0xde   : > { %320 = vst [vmem:[%s482_s28 + $0x28] sm:$0xff] %v289_v35  ;;  %v291_v39 = vadd.f32 %v290_v38, %v192_v12  ;;  %328 = vst [vmem:[%s482_s28 + $0x68] sm:$0xff] %v309_v37  ;;  %v311_v41 = vadd.f32 %v310_v40, %v192_v12 }
  0xdf   : > { %v292_v42 = vpop.f32.mrf.mxu0  ;;  %v312_v44 = vpop.f32.mrf.mxu1 }
  0xe0   : > { %321 = vst [vmem:[%s482_s28 + $0x30] sm:$0xff] %v291_v39  ;;  %v293_v43 = vadd.f32 %v292_v42, %v196_v13  ;;  %329 = vst [vmem:[%s482_s28 + $0x70] sm:$0xff] %v311_v41  ;;  %v313_v45 = vadd.f32 %v312_v44, %v196_v13 }
  0xe2   : > { %322 = vst [vmem:[%s482_s28 + $0x38] sm:$0xff] %v293_v43  ;;  %330 = vst [vmem:[%s482_s28 + $0x78] sm:$0xff] %v313_v45 }
  0xe3 PF: > { %s13_s12 = sadd.s32 1, %s436_s12  }
  0xe4   : > { %p10_p4 = scmp.ge.s32.totalorder %s13_s12, 4  }
  0xe6   :  { %12 = sbr.rel (!%p10_p4) target bundleno = 1 (0x1), region = 62 }

</bundles_post_ra>
